<compile_context>
chip_gen: v6e
topology: v6e:2x2x1
jax: 0.10.0
libtpu: 0.0.40
codegen_flags: <defaults>
</compile_context>

<pallas_src>
import jax
import jax.numpy as jnp
from jax.experimental import pallas as pl
from jax.experimental.pallas import tpu as pltpu


# ----------------------------- configuration -------------------------------
# Small synthetic "flags" consistent with the module's __init__.
INPUT_DIM = 16          # flags.input_dim[mod_num]
HIDDEN_DIM = 256        # hard-coded output_dim = 256 in the module
NUM_HIDDEN_LAYERS = 2   # flags.num_hidden_layer_encoder
STYLE_DIM = 8           # flags.style_dim[mod_num]
CLASS_DIM = 24          # flags.class_dim
BATCH = 8

HEAD_DIM = 2 * STYLE_DIM + 2 * CLASS_DIM  # packed [style_mu|style_lv|class_mu|class_lv]
HEAD_PAD = 128                            # lane-dense packed-head width (zero padded)


# ------------------------------- kernel ------------------------------------
def _encoder_kernel(
    x_ref,    # [TB, INPUT_DIM]        bf16
    w1_ref,   # [INPUT_DIM, HIDDEN]    bf16
    b1_ref,   # [1, HIDDEN]            f32
    w2_ref,   # [HIDDEN, HIDDEN]       bf16
    b2_ref,   # [1, HIDDEN]            f32
    wh_ref,   # [HIDDEN, HEAD_PAD]     bf16   (all four heads packed + zero pad)
    bh_ref,   # [1, HEAD_PAD]          f32
    out_ref,  # out: [TB, HEAD_PAD]    f32
):
    # ---- hidden layer 1:  h = ReLU(x @ W1 + b1) ----
    h = jnp.dot(
        x_ref[...], w1_ref[...], preferred_element_type=jnp.float32,
    ) + b1_ref[...]
    h = jnp.maximum(h, 0.0)
    # Dropout(eval) == identity.

    # ---- hidden layer 2:  h = ReLU(h @ W2 + b2) ----
    h = jnp.dot(
        h.astype(jnp.bfloat16), w2_ref[...], preferred_element_type=jnp.float32,
    ) + b2_ref[...]
    h = jnp.maximum(h, 0.0)

    # ---- packed heads: [style_mu | style_logvar | class_mu | class_logvar | pad] ----
    out_ref[...] = (
        jnp.dot(
            h.astype(jnp.bfloat16), wh_ref[...], preferred_element_type=jnp.float32,
        ) + bh_ref[...]
    ).astype(out_ref.dtype)


# --------------------------- param preparation -------------------------------
def prepare_params(params):
    """One-time packing/casting of weights into kernel-ready form.

    Done OUTSIDE the jitted forward so the per-call path does no repacking
    or recasting of weights.
    """
    # Pack the four head projections into one weight/bias and zero-pad the
    # column dimension to 128 lanes (unmasked stores, full-lane MXU tile).
    wh = jnp.concatenate(
        [params["wsm"], params["wslv"], params["wcm"], params["wclv"]], axis=1
    )
    bh = jnp.concatenate(
        [params["bsm"], params["bslv"], params["bcm"], params["bclv"]], axis=0
    ).reshape(1, -1)
    pad = HEAD_PAD - wh.shape[1]
    wh = jnp.pad(wh, ((0, 0), (0, pad)))
    bh = jnp.pad(bh, ((0, 0), (0, pad)))

    return {
        # MXU operands in bf16 (halves weight DMA); biases stay f32.
        "w1": params["w1"].astype(jnp.bfloat16),
        "b1": params["b1"].reshape(1, -1).astype(jnp.float32),
        "w2": params["w2"].astype(jnp.bfloat16),
        "b2": params["b2"].reshape(1, -1).astype(jnp.float32),
        "wh": wh.astype(jnp.bfloat16),
        "bh": bh.astype(jnp.float32),
    }


# ------------------------------- wrapper ------------------------------------
def _pick_batch_tile(b):
    """Batch tile: full (padded) batch when small, 256 rows for large batches.

    256 = MXU M width on v6e/v7x and a multiple of v5e's 128; large batches
    get >= 2 grid steps so the 'parallel' axis can feed v7x's 2nd TensorCore.
    """
    if b <= 256:
        # pad to a multiple of 8 sublanes
        return -(-b // 8) * 8
    return 256


@jax.jit
def encoder_forward(x, kparams):
    """Fused Pallas forward. Returns (style_mu, style_logvar, class_mu, class_logvar).

    `kparams` must come from prepare_params() (bf16, packed, padded weights).
    """
    b = x.shape[0]
    tb = _pick_batch_tile(b)
    pad_b = (-b) % tb
    # Streamed input in bf16 (matches MXU operand dtype; halves input DMA).
    x = x.astype(jnp.bfloat16)
    if pad_b:
        x = jnp.pad(x, ((0, pad_b), (0, 0)))
    bp = b + pad_b
    grid = (bp // tb,)

    act_spec = lambda shape: pl.BlockSpec(shape, lambda i: (i, 0))
    wgt_spec = lambda shape: pl.BlockSpec(shape, lambda i: (0, 0))

    packed = pl.pallas_call(
        _encoder_kernel,
        grid=grid,
        out_shape=jax.ShapeDtypeStruct((bp, HEAD_PAD), jnp.float32),
        in_specs=[
            act_spec((tb, INPUT_DIM)),
            wgt_spec((INPUT_DIM, HIDDEN_DIM)),
            wgt_spec((1, HIDDEN_DIM)),
            wgt_spec((HIDDEN_DIM, HIDDEN_DIM)),
            wgt_spec((1, HIDDEN_DIM)),
            wgt_spec((HIDDEN_DIM, HEAD_PAD)),
            wgt_spec((1, HEAD_PAD)),
        ],
        out_specs=act_spec((tb, HEAD_PAD)),
        compiler_params=pltpu.CompilerParams(dimension_semantics=("parallel",)),
    )(x, kparams["w1"], kparams["b1"], kparams["w2"], kparams["b2"],
      kparams["wh"], kparams["bh"])

    packed = packed[:b]
    style_mu = packed[:, :STYLE_DIM]
    style_logvar = packed[:, STYLE_DIM:2 * STYLE_DIM]
    class_mu = packed[:, 2 * STYLE_DIM:2 * STYLE_DIM + CLASS_DIM]
    class_logvar = packed[:, 2 * STYLE_DIM + CLASS_DIM:HEAD_DIM]
    return style_mu, style_logvar, class_mu, class_logvar


# --------------------------- param initialization ---------------------------
def init_params(key):
    """Deterministic PyTorch-Linear-style init (uniform +/- 1/sqrt(fan_in))."""
    def linear(k, fan_in, fan_out):
        k_w, k_b = jax.random.split(k)
        bound = 1.0 / jnp.sqrt(fan_in)
        w = jax.random.uniform(k_w, (fan_in, fan_out), jnp.float32, -bound, bound)
        b = jax.random.uniform(k_b, (fan_out,), jnp.float32, -bound, bound)
        return w, b

    keys = jax.random.split(key, 6)
    w1, b1 = linear(keys[0], INPUT_DIM, HIDDEN_DIM)
    w2, b2 = linear(keys[1], HIDDEN_DIM, HIDDEN_DIM)
    wsm, bsm = linear(keys[2], HIDDEN_DIM, STYLE_DIM)
    wslv, bslv = linear(keys[3], HIDDEN_DIM, STYLE_DIM)
    wcm, bcm = linear(keys[4], HIDDEN_DIM, CLASS_DIM)
    wclv, bclv = linear(keys[5], HIDDEN_DIM, CLASS_DIM)
    return {
        "w1": w1, "b1": b1, "w2": w2, "b2": b2,
        "wsm": wsm, "bsm": bsm, "wslv": wslv, "bslv": bslv,
        "wcm": wcm, "bcm": bcm, "wclv": wclv, "bclv": bclv,
    }


# ------------------------------ reference -----------------------------------
def encoder_ref(x, p):
    h = jnp.maximum(x @ p["w1"] + p["b1"], 0.0)
    h = jnp.maximum(h @ p["w2"] + p["b2"], 0.0)
    return (
        h @ p["wsm"] + p["bsm"],
        h @ p["wslv"] + p["bslv"],
        h @ p["wcm"] + p["bcm"],
        h @ p["wclv"] + p["bclv"],
    )


# --------------------------------- main --------------------------------------
if __name__ == "__main__":
    key = jax.random.PRNGKey(0)
    k_x, k_p = jax.random.split(key)

    x = jax.random.normal(k_x, (BATCH, INPUT_DIM), jnp.float32)
    params = init_params(k_p)

    # One-time weight packing / bf16 cast (kept outside the per-call path).
    kparams = prepare_params(params)
    kparams = jax.tree_util.tree_map(jax.block_until_ready, kparams)

    outs = encoder_forward(x, kparams)
    jax.block_until_ready(outs)

    refs = encoder_ref(x, params)
    style_mu, style_logvar, class_mu, class_logvar = outs

    assert style_mu.shape == (BATCH, STYLE_DIM)
    assert style_logvar.shape == (BATCH, STYLE_DIM)
    assert class_mu.shape == (BATCH, CLASS_DIM)
    assert class_logvar.shape == (BATCH, CLASS_DIM)
    # bf16 MXU operands with f32 accumulation -> loosened tolerance vs f32 ref.
    # Note: downstream exp(logvar) consumers should be aware of bf16 error.
    for got, want in zip(outs, refs):
        assert jnp.allclose(got, want, atol=2e-2, rtol=2e-2), (
            float(jnp.max(jnp.abs(got - want))))

    print("KERNEL_OK")
</pallas_src>

<mosaic_0001>
module attributes {stable_mosaic.version = 11 : i64} {
  func.func @_encoder_kernel(%arg0: i32, %arg1: memref<8x16xbf16, #tpu.memory_space<vmem>>, %arg2: memref<16x256xbf16, #tpu.memory_space<vmem>>, %arg3: memref<1x256xf32, #tpu.memory_space<vmem>>, %arg4: memref<256x256xbf16, #tpu.memory_space<vmem>>, %arg5: memref<1x256xf32, #tpu.memory_space<vmem>>, %arg6: memref<256x128xbf16, #tpu.memory_space<vmem>>, %arg7: memref<1x128xf32, #tpu.memory_space<vmem>>, %arg8: memref<8x128xf32, #tpu.memory_space<vmem>>) attributes {dimension_semantics = [#tpu.dimension_semantics<parallel>], iteration_bounds = array<i64: 1>, scalar_prefetch = 0 : i64, scratch_operands = 0 : i64, tpu.core_type = #tpu.core_type<tc>, window_params = [{transform_indices = @transform_0, window_bounds = array<i64: 8, 16>}, {pipeline_mode = #tpu.pipeline_mode<synchronous>, transform_indices = @transform_1, window_bounds = array<i64: 16, 256>}, {pipeline_mode = #tpu.pipeline_mode<synchronous>, transform_indices = @transform_2, window_bounds = array<i64: 1, 256>}, {pipeline_mode = #tpu.pipeline_mode<synchronous>, transform_indices = @transform_3, window_bounds = array<i64: 256, 256>}, {pipeline_mode = #tpu.pipeline_mode<synchronous>, transform_indices = @transform_4, window_bounds = array<i64: 1, 256>}, {pipeline_mode = #tpu.pipeline_mode<synchronous>, transform_indices = @transform_5, window_bounds = array<i64: 256, 128>}, {pipeline_mode = #tpu.pipeline_mode<synchronous>, transform_indices = @transform_6, window_bounds = array<i64: 1, 128>}, {transform_indices = @transform_7, window_bounds = array<i64: 8, 128>}]} {
    %c0 = arith.constant 0 : index
    %c0_0 = arith.constant 0 : index
    %0 = vector.load %arg1[%c0, %c0_0] : memref<8x16xbf16, #tpu.memory_space<vmem>>, vector<8x16xbf16>
    %c0_1 = arith.constant 0 : index
    %c0_2 = arith.constant 0 : index
    %1 = vector.load %arg2[%c0_1, %c0_2] : memref<16x256xbf16, #tpu.memory_space<vmem>>, vector<16x256xbf16>
    %cst = arith.constant dense<0.000000e+00> : vector<8x256xf32>
    %2 = tpu.matmul %0, %1, %cst {dimension_numbers = #tpu.dot_dimension_numbers<[1], [0], [0], [1], [0, 0, 1, 1], [], []>} : vector<8x16xbf16>, vector<16x256xbf16>, vector<8x256xf32> -> vector<8x256xf32>
    %c0_3 = arith.constant 0 : index
    %c0_4 = arith.constant 0 : index
    %3 = vector.load %arg3[%c0_3, %c0_4] : memref<1x256xf32, #tpu.memory_space<vmem>>, vector<1x256xf32>
    %4 = vector.broadcast %3 : vector<1x256xf32> to vector<8x256xf32>
    %5 = arith.addf %2, %4 : vector<8x256xf32>
    %cst_5 = arith.constant 0.000000e+00 : f32
    %6 = vector.broadcast %cst_5 : f32 to vector<8x256xf32>
    %7 = arith.maximumf %5, %6 : vector<8x256xf32>
    %8 = arith.truncf %7 : vector<8x256xf32> to vector<8x256xbf16>
    %c0_6 = arith.constant 0 : index
    %c0_7 = arith.constant 0 : index
    %9 = vector.load %arg4[%c0_6, %c0_7] : memref<256x256xbf16, #tpu.memory_space<vmem>>, vector<256x256xbf16>
    %cst_8 = arith.constant dense<0.000000e+00> : vector<8x256xf32>
    %10 = tpu.matmul %8, %9, %cst_8 {dimension_numbers = #tpu.dot_dimension_numbers<[1], [0], [0], [1], [0, 0, 1, 1], [], []>} : vector<8x256xbf16>, vector<256x256xbf16>, vector<8x256xf32> -> vector<8x256xf32>
    %c0_9 = arith.constant 0 : index
    %c0_10 = arith.constant 0 : index
    %11 = vector.load %arg5[%c0_9, %c0_10] : memref<1x256xf32, #tpu.memory_space<vmem>>, vector<1x256xf32>
    %12 = vector.broadcast %11 : vector<1x256xf32> to vector<8x256xf32>
    %13 = arith.addf %10, %12 : vector<8x256xf32>
    %cst_11 = arith.constant 0.000000e+00 : f32
    %14 = vector.broadcast %cst_11 : f32 to vector<8x256xf32>
    %15 = arith.maximumf %13, %14 : vector<8x256xf32>
    %16 = arith.truncf %15 : vector<8x256xf32> to vector<8x256xbf16>
    %c0_12 = arith.constant 0 : index
    %c0_13 = arith.constant 0 : index
    %17 = vector.load %arg6[%c0_12, %c0_13] : memref<256x128xbf16, #tpu.memory_space<vmem>>, vector<256x128xbf16>
    %cst_14 = arith.constant dense<0.000000e+00> : vector<8x128xf32>
    %18 = tpu.matmul %16, %17, %cst_14 {dimension_numbers = #tpu.dot_dimension_numbers<[1], [0], [0], [1], [0, 0, 1, 1], [], []>} : vector<8x256xbf16>, vector<256x128xbf16>, vector<8x128xf32> -> vector<8x128xf32>
    %c0_15 = arith.constant 0 : index
    %c0_16 = arith.constant 0 : index
    %19 = vector.load %arg7[%c0_15, %c0_16] : memref<1x128xf32, #tpu.memory_space<vmem>>, vector<1x128xf32>
    %20 = vector.broadcast %19 : vector<1x128xf32> to vector<8x128xf32>
    %21 = arith.addf %18, %20 : vector<8x128xf32>
    %c0_17 = arith.constant 0 : index
    %c0_18 = arith.constant 0 : index
    %22 = vector.load %arg8[%c0_17, %c0_18] : memref<8x128xf32, #tpu.memory_space<vmem>>, vector<8x128xf32>
    tpu.vector_store %arg8[%c0_17, %c0_18], %21 {strides = array<i32>} : memref<8x128xf32, #tpu.memory_space<vmem>>, vector<8x128xf32>,
    return
  }
  func.func @transform_0(%arg0: i32) -> (i32, i32) {
    %c0_i32 = arith.constant 0 : i32
    %c0_i32_0 = arith.constant 0 : i32
    return %arg0, %c0_i32 : i32, i32
  }
  func.func @transform_1(%arg0: i32) -> (i32, i32) {
    %c0_i32 = arith.constant 0 : i32
    %c0_i32_0 = arith.constant 0 : i32
    %c0_i32_1 = arith.constant 0 : i32
    return %c0_i32, %c0_i32_0 : i32, i32
  }
  func.func @transform_2(%arg0: i32) -> (i32, i32) {
    %c0_i32 = arith.constant 0 : i32
    %c0_i32_0 = arith.constant 0 : i32
    %c0_i32_1 = arith.constant 0 : i32
    return %c0_i32, %c0_i32_0 : i32, i32
  }
  func.func @transform_3(%arg0: i32) -> (i32, i32) {
    %c0_i32 = arith.constant 0 : i32
    %c0_i32_0 = arith.constant 0 : i32
    %c0_i32_1 = arith.constant 0 : i32
    return %c0_i32, %c0_i32_0 : i32, i32
  }
  func.func @transform_4(%arg0: i32) -> (i32, i32) {
    %c0_i32 = arith.constant 0 : i32
    %c0_i32_0 = arith.constant 0 : i32
    %c0_i32_1 = arith.constant 0 : i32
    return %c0_i32, %c0_i32_0 : i32, i32
  }
  func.func @transform_5(%arg0: i32) -> (i32, i32) {
    %c0_i32 = arith.constant 0 : i32
    %c0_i32_0 = arith.constant 0 : i32
    %c0_i32_1 = arith.constant 0 : i32
    return %c0_i32, %c0_i32_0 : i32, i32
  }
  func.func @transform_6(%arg0: i32) -> (i32, i32) {
    %c0_i32 = arith.constant 0 : i32
    %c0_i32_0 = arith.constant 0 : i32
    %c0_i32_1 = arith.constant 0 : i32
    return %c0_i32, %c0_i32_0 : i32, i32
  }
  func.func @transform_7(%arg0: i32) -> (i32, i32) {
    %c0_i32 = arith.constant 0 : i32
    %c0_i32_0 = arith.constant 0 : i32
    return %arg0, %c0_i32 : i32, i32
  }
}

</mosaic_0001>

<bundles_post_ra>
// kernel: encoder_forward.1
= control target key start
LH: loop header
LB: loop body
LE: loop exit
PB: predicated region body
PF: predicated region fallthrough
CT: control target
= control target key end

     0   :  { %12 = vsyncpa [#allocation3], 0  ;;  %s859_s0 = inlined_call_operand.vmem [shape: bf16[8,16], index: 0, kind: input, shape index: {}]   ;;  %s860_s1 = inlined_call_operand.vmem [shape: bf16[16,256], index: 1, kind: input, shape index: {}]   ;;  %s861_s2 = inlined_call_operand.vmem [shape: f32[1,256], index: 2, kind: input, shape index: {}]   ;;  %s862_s3 = inlined_call_operand.hbm [shape: bf16[256,256], index: 3, kind: input, shape index: {}]   ;;  %s863_s4 = inlined_call_operand.hbm [shape: f32[1,256], index: 4, kind: input, shape index: {}]   ;;  %s864_s5 = inlined_call_operand.hbm [shape: bf16[256,128], index: 5, kind: input, shape index: {}]   ;;  %s865_s6 = inlined_call_operand.vmem [shape: f32[1,128], index: 6, kind: input, shape index: {}]   ;;  %s866_s7 = inlined_call_operand.vmem [shape: f32[8,128], index: 7, kind: output, shape index: {}]  }
   0x1   :  { %13 = vsyncpa [#allocation5], 0  ;;  %s784_s24 = smov [#allocation4]   ;;  %s785_s26 = smov [#allocation2]  }
   0x2   :  { %s38_s25 = sshll.u32 %s784_s24, 4  ;;  %s25_s27 = sshll.u32 %s785_s26, 4  ;;  %s39_s25 = int_to_ptr.vmem [resolvable:$true] %s38_s25  ;;  %s26_s27 = int_to_ptr.vmem [resolvable:$true] %s25_s27 }
   0x3   :  { %s728_s28 = scalar_lea.vmem %s39_s25, 32  ;;  %p733_p1 = scmp.lt.s32.totalorder %s39_s25, %s39_s25 }
   0x4   :  { %p729_p0 = scmp.ne.s32.totalorder %s39_s25, %s728_s28  ;;  %p734_p2 = scmp.lt.s32.totalorder %s728_s28, %s728_s28 }
   0x6   :  { %p735_p3 = por %p734_p2, %p733_p1 }
   0x8   :  { %p736_p4 = pnand %p735_p3, %p729_p0 }
   0xa   :  { %739 = shalt.err (!%p736_p4)
}
   0xb   :  { %41 = dma.hbm_to_vmem [thread:$0]  %s863_s4, 32, %s39_s25, [#allocation5]  }
   0xc   :  { %s748_s8 = scalar_lea.vmem %s26_s27, 4096  ;;  %p753_p6 = scmp.lt.s32.totalorder %s26_s27, %s26_s27 }
   0xd   :  { %p749_p5 = scmp.ne.s32.totalorder %s26_s27, %s748_s8  ;;  %p754_p7 = scmp.lt.s32.totalorder %s748_s8, %s748_s8 }
   0xf   :  { %p755_p8 = por %p754_p7, %p753_p6 }
  0x11   :  { %p756_p9 = pnand %p755_p8, %p749_p5 }
  0x13   :  { %759 = shalt.err (!%p756_p9)
}
  0x14   :  { %s786_s9 = smov 128   ;;  %s787_s10 = smov 8  }
  0x15   :  { %31 = dma.hbm_to_vmem [thread:$0]  %s862_s3, 4096, %s26_s27, [#allocation3], %s786_s9, %s786_s9, %s787_s10  }
  0x16   :  { %s788_s13 = smov [#allocation6]  }
  0x17   :  { %s47_s14 = sshll.u32 %s788_s13, 4  ;;  %s48_s14 = int_to_ptr.vmem [resolvable:$true] %s47_s14 }
  0x18   :  { %s768_s15 = scalar_lea.vmem %s48_s14, 2048  ;;  %p773_p11 = scmp.lt.s32.totalorder %s48_s14, %s48_s14 }
  0x19   :  { %p769_p10 = scmp.ne.s32.totalorder %s48_s14, %s768_s15  ;;  %p774_p12 = scmp.lt.s32.totalorder %s768_s15, %s768_s15 }
  0x1b   :  { %p775_p13 = por %p774_p12, %p773_p11 }
  0x1d   :  { %p776_p0 = pnand %p775_p13, %p769_p10 }
  0x1f   :  { %779 = shalt.err (!%p776_p0)
}
  0x20   :  { %s789_s4 = smov 64   ;;  %s790_s16 = smov 4  }
  0x21   :  { %53 = dma.hbm_to_vmem [thread:$0]  %s864_s5, 2048, %s48_s14, [#allocation5], %s789_s4, %s789_s4, %s790_s16  }
  0x22   :  { %780 = dma.done.wait [#allocation3], 4096  }
  0x23   :  { %781 = vsyncadd [#allocation3], 4294963200 }
  0x24   :  { %782 = dma.done.wait [#allocation5], 2080  }
  0x25   :  { %783 = vsyncadd [#allocation5], 4294965216  ;;  %v791_v0 = vmov 0   ;;  %v653_v1 = vld [vmem:[%s860_s1 + $0x4] ss:$8 sps:$4 sm:$0xff]   ;;  %vm91_vm0 = vcmask 130048   ;;  %v71_v48 = vlaneseq }
  0x26   :  { %127 = vmatprep.mubr.bf16.mxu0 %v791_v0  ;;  %v655_v2 = vld [vmem:[%s860_s1] ss:$8 sps:$4 sm:$0xff]   ;;  %109 = vmatprep.subr.bf16.mxu0 %v653_v1  ;;  %v656_v4 = vld [vmem:[#allocation2 + $0x74] ss:$8 sps:$4 sm:$0xff]   ;;  %v658_v5 = vld [vmem:[#allocation2 + $0x70] ss:$8 sps:$4 sm:$0xff]  }
  0x27   :  { %v66_v3 = vld [vmem:[%s859_s0] sm:$0xf]  ;;  %110 = vmatpush1.bf16.msra.mxu0 %v655_v2  ;;  %v659_v6 = vld [vmem:[#allocation2 + $0x64] ss:$8 sps:$4 sm:$0xff]   ;;  %344 = vmatprep.subr.bf16.mxu1 %v656_v4  ;;  %v662_v8 = vld [vmem:[#allocation2 + $0x54] ss:$8 sps:$4 sm:$0xff]  }
  0x28   :  { %345 = vmatpush1.bf16.msra.mxu1 %v658_v5  ;;  %v661_v7 = vld [vmem:[#allocation2 + $0x60] ss:$8 sps:$4 sm:$0xff]   ;;  %v664_v9 = vld [vmem:[#allocation2 + $0x50] ss:$8 sps:$4 sm:$0xff]   ;;  %v665_v10 = vld [vmem:[#allocation2 + $0x44] ss:$8 sps:$4 sm:$0xff]  }
  0x29   :  { %346 = vmatprep.subr.bf16.mxu1 %v659_v6  ;;  %v667_v11 = vld [vmem:[#allocation2 + $0x40] ss:$8 sps:$4 sm:$0xff]   ;;  %v668_v12 = vld [vmem:[#allocation2 + $0x34] ss:$8 sps:$4 sm:$0xff]   ;;  %v670_v13 = vld [vmem:[#allocation2 + $0x30] ss:$8 sps:$4 sm:$0xff]  }
  0x2a   :  { %573 = vmatmul.mubr.msk.bf16.vlgmr.msra.gmra.mxu0 %vm91_vm0, %v66_v3  ;;  %v671_v14 = vld [vmem:[#allocation2 + $0x24] ss:$8 sps:$4 sm:$0xff]   ;;  %v673_v15 = vld [vmem:[#allocation2 + $0x20] ss:$8 sps:$4 sm:$0xff]   ;;  %v674_v16 = vld [vmem:[#allocation2 + $0x14] ss:$8 sps:$4 sm:$0xff]  }
  0x2b   :  { %v676_v17 = vld [vmem:[#allocation2 + $0x10] ss:$8 sps:$4 sm:$0xff]   ;;  %v677_v18 = vld [vmem:[#allocation2 + $0x4] ss:$8 sps:$4 sm:$0xff]   ;;  %v679_v19 = vld [vmem:[#allocation2] ss:$8 sps:$4 sm:$0xff]  }
  0x2c   :  { %347 = vmatpush1.bf16.msra.mxu1 %v661_v7  ;;  %v680_v20 = vld [vmem:[#allocation2 + $0xf4] ss:$8 sps:$4 sm:$0xff]   ;;  %v682_v21 = vld [vmem:[#allocation2 + $0xf0] ss:$8 sps:$4 sm:$0xff]   ;;  %v683_v22 = vld [vmem:[#allocation2 + $0xe4] ss:$8 sps:$4 sm:$0xff]  }
  0x2d   :  { %348 = vmatprep.subr.bf16.mxu1 %v662_v8  ;;  %v685_v23 = vld [vmem:[#allocation2 + $0xe0] ss:$8 sps:$4 sm:$0xff]   ;;  %v686_v24 = vld [vmem:[#allocation2 + $0xd4] ss:$8 sps:$4 sm:$0xff]   ;;  %v688_v25 = vld [vmem:[#allocation2 + $0xd0] ss:$8 sps:$4 sm:$0xff]  }
  0x2e   :  { %v689_v26 = vld [vmem:[#allocation2 + $0xc4] ss:$8 sps:$4 sm:$0xff]   ;;  %v691_v27 = vld [vmem:[#allocation2 + $0xc0] ss:$8 sps:$4 sm:$0xff]   ;;  %v692_v28 = vld [vmem:[#allocation2 + $0xb4] ss:$8 sps:$4 sm:$0xff]  }
  0x2f   :  { %v694_v29 = vld [vmem:[#allocation2 + $0xb0] ss:$8 sps:$4 sm:$0xff]   ;;  %v695_v30 = vld [vmem:[#allocation2 + $0xa4] ss:$8 sps:$4 sm:$0xff]   ;;  %v697_v31 = vld [vmem:[#allocation2 + $0xa0] ss:$8 sps:$4 sm:$0xff]  }
  0x30   :  { %349 = vmatpush1.bf16.msra.mxu1 %v664_v9  ;;  %v698_v32 = vld [vmem:[#allocation2 + $0x94] ss:$8 sps:$4 sm:$0xff]   ;;  %v700_v33 = vld [vmem:[#allocation2 + $0x90] ss:$8 sps:$4 sm:$0xff]   ;;  %v701_v34 = vld [vmem:[#allocation2 + $0x84] ss:$8 sps:$4 sm:$0xff]  }
  0x31   :  { %350 = vmatprep.subr.bf16.mxu1 %v665_v10  ;;  %v703_v35 = vld [vmem:[#allocation2 + $0x80] ss:$8 sps:$4 sm:$0xff]   ;;  %v706_v38 = vld [vmem:[#allocation6 + $0x70] sm:$0xff]   ;;  %v72_v49 = vshrl.u32 %v71_v48, 7 }
  0x32   :  { %v704_v36 = vld [vmem:[#allocation6 + $0x78] sm:$0xff]   ;;  %v707_v39 = vld [vmem:[#allocation6 + $0x30] sm:$0xff]   ;;  %v708_v40 = vld [vmem:[#allocation6 + $0x68] sm:$0xff]  }
  0x33   :  { %v705_v37 = vld [vmem:[#allocation6 + $0x38] sm:$0xff]   ;;  %623 = vmatprep.subr.bf16.mxu0 %v704_v36  ;;  %v709_v41 = vld [vmem:[#allocation6 + $0x28] sm:$0xff]   ;;  %v710_v42 = vld [vmem:[#allocation6 + $0x60] sm:$0xff]   ;;  %v73_v50 = vsub.s32 0, %v72_v49  ;;  %v77_v52 = vsub.s32 1, %v72_v49 }
  0x34   :  { %351 = vmatpush1.bf16.msra.mxu1 %v667_v11  ;;  %624 = vmatpush3.bf16.msra.mxu0 %v705_v37  ;;  %v711_v43 = vld [vmem:[#allocation6 + $0x20] sm:$0xff]   ;;  %v712_v44 = vld [vmem:[#allocation6 + $0x58] sm:$0xff]   ;;  %v714_v46 = vld [vmem:[#allocation6 + $0x50] sm:$0xff]  }
  0x35   :  { %352 = vmatprep.subr.bf16.mxu1 %v668_v12  ;;  %625 = vmatprep.subr.bf16.mxu0 %v706_v38  ;;  %v713_v45 = vld [vmem:[#allocation6 + $0x18] sm:$0xff]   ;;  %v715_v47 = vld [vmem:[#allocation6 + $0x10] sm:$0xff]   ;;  %v716_v1 = vld [vmem:[#allocation6 + $0x48] sm:$0xff]  }
  0x36   :  { %v69_v51 = vld [vmem:[%s861_s2] sm:$0x3]  ;;  %v717_v2 = vld [vmem:[#allocation6 + $0x8] sm:$0xff]   ;;  %v718_v3 = vld [vmem:[#allocation6 + $0x40] sm:$0xff]  }
  0x37   :  { %v74_v53 = vrot.slane %v69_v51, %v73_v50  ;;  %v78_v54 = vrot.slane %v69_v51, %v77_v52  ;;  %v719_v4 = vld [vmem:[#allocation6] sm:$0xff]   ;;  %v172_v5 = vld [vmem:[#allocation4] sm:$0x3] }
  0x38   :  { %353 = vmatpush1.bf16.msra.mxu1 %v670_v13  ;;  %626 = vmatpush3.bf16.msra.mxu0 %v707_v39  ;;  %v177_v6 = vrot.slane %v172_v5, %v73_v50  ;;  %v181_v7 = vrot.slane %v172_v5, %v77_v52 }
  0x39   :  { %354 = vmatprep.subr.bf16.mxu1 %v671_v14  ;;  %627 = vmatprep.subr.bf16.mxu0 %v708_v40 }
  0x3c   :  { %355 = vmatpush1.bf16.msra.mxu1 %v673_v15  ;;  %628 = vmatpush3.bf16.msra.mxu0 %v709_v41 }
  0x3d   :  { %356 = vmatprep.subr.bf16.mxu1 %v674_v16  ;;  %629 = vmatprep.subr.bf16.mxu0 %v710_v42 }
  0x40   :  { %357 = vmatpush1.bf16.msra.mxu1 %v676_v17  ;;  %630 = vmatpush3.bf16.msra.mxu0 %v711_v43 }
  0x41   :  { %358 = vmatprep.subr.bf16.mxu1 %v677_v18  ;;  %631 = vmatprep.subr.bf16.mxu0 %v712_v44 }
  0x44   :  { %359 = vmatpush1.bf16.msra.mxu1 %v679_v19  ;;  %632 = vmatpush3.bf16.msra.mxu0 %v713_v45  ;;  %v606_v19 = vld [vmem:[%s865_s6] ss:$0 sm:$0xff] }
  0x45   :  { %360 = vmatprep.subr.bf16.mxu1 %v680_v20  ;;  %633 = vmatprep.subr.bf16.mxu0 %v714_v46 }
  0x48   :  { %361 = vmatpush2.bf16.msra.mxu1 %v682_v21  ;;  %634 = vmatpush3.bf16.msra.mxu0 %v715_v47 }
  0x49   :  { %362 = vmatprep.subr.bf16.mxu1 %v683_v22  ;;  %635 = vmatprep.subr.bf16.mxu0 %v716_v1 }
  0x4c   :  { %363 = vmatpush2.bf16.msra.mxu1 %v685_v23  ;;  %636 = vmatpush3.bf16.msra.mxu0 %v717_v2 }
  0x4d   :  { %364 = vmatprep.subr.bf16.mxu1 %v686_v24  ;;  %637 = vmatprep.subr.bf16.mxu0 %v718_v3 }
  0x50   :  { %365 = vmatpush2.bf16.msra.mxu1 %v688_v25  ;;  %638 = vmatpush3.bf16.msra.mxu0 %v719_v4 }
  0x51   :  { %366 = vmatprep.subr.bf16.mxu1 %v689_v26 }
  0x54   :  { %367 = vmatpush2.bf16.msra.mxu1 %v691_v27 }
  0x55   :  { %368 = vmatprep.subr.bf16.mxu1 %v692_v28 }
  0x58   :  { %369 = vmatpush2.bf16.msra.mxu1 %v694_v29 }
  0x59   :  { %370 = vmatprep.subr.bf16.mxu1 %v695_v30 }
  0x5c   :  { %371 = vmatpush2.bf16.msra.mxu1 %v697_v31 }
  0x5d   :  { %372 = vmatprep.subr.bf16.mxu1 %v698_v32 }
  0x60   :  { %373 = vmatpush2.bf16.msra.mxu1 %v700_v33 }
  0x61   :  { %374 = vmatprep.subr.bf16.mxu1 %v701_v34 }
  0x64   :  { %375 = vmatpush2.bf16.msra.mxu1 %v703_v35 }
  0xea   :  { %v129_v55 = vpop.f32.mrf.mxu0 }
  0xeb   :  { %v130_v56 = vadd.f32 %v129_v55, %v74_v53 }
  0xec   :  { %v131_v57 = vpop.f32.mrf.mxu0 }
  0xed   :  { %v132_v58 = vadd.f32 %v131_v57, %v78_v54  ;;  %v136_v59 = vmax.f32 %v130_v56, 0.0 }
  0xee   :  { %v133_v60 = vpop.f32.mrf.mxu0 }
  0xef   :  { %v137_v61 = vmax.f32 %v132_v58, 0.0  ;;  %v138_v0 = vpack.c.bf16 %v136_v59, %v136_v59 }
  0xf0   :  { %v134_v62 = vpop.f32.mrf.mxu0 }
  0xf1   :  { %v139_v63 = vpack.c.bf16 %v137_v61, %v137_v61 }
  0xf3   :  { %376 = vmatprep.mubr.bf16.mxu1 %v139_v63 }
  0xf4   :  { %377 = vmatmul.mubr.bf16.vlgmr.msra.gmra.mxu1 %v138_v0 }
 0x1b4   :  { %v378_v8 = vpop.f32.mrf.mxu1 }
 0x1b5   :  { %v379_v9 = vadd.f32 %v378_v8, %v177_v6 }
 0x1b6   :  { %v380_v10 = vpop.f32.mrf.mxu1 }
 0x1b7   :  { %v381_v11 = vadd.f32 %v380_v10, %v181_v7  ;;  %v385_v12 = vmax.f32 %v379_v9, 0.0 }
 0x1b8   :  { %v382_v13 = vpop.f32.mrf.mxu1 }
 0x1b9   :  { %v386_v14 = vmax.f32 %v381_v11, 0.0  ;;  %v387_v17 = vpack.c.bf16 %v385_v12, %v385_v12 }
 0x1ba   :  { %v383_v15 = vpop.f32.mrf.mxu1 }
 0x1bb   :  { %v388_v16 = vpack.c.bf16 %v386_v14, %v386_v14 }
 0x1bd   :  { %556 = vmatprep.mubr.bf16.mxu0 %v388_v16 }
 0x1be   :  { %557 = vmatmul.mubr.bf16.vlgmr.msra.gmra.mxu0 %v387_v17 }
 0x27e   :  { %v639_v18 = vpop.f32.mrf.mxu0 }
 0x280   :  { %v640_v20 = vpop.f32.mrf.mxu0 }
 0x281   :  { %v641_v21 = vadd.f32 %v640_v20, %v639_v18 }
 0x282   :  { %v642_v22 = vpop.f32.mrf.mxu0 }
 0x283   :  { %v559_v23 = vadd.f32 %v641_v21, %v606_v19 }
 0x284   :  { %v643_v24 = vpop.f32.mrf.mxu0 }
 0x285   :  { %564 = vst [vmem:[%s866_s7] sm:$0xff] %v559_v23 }
 0x286   :  { %569 = vsyncpa [#allocation3], 1 }
 0x287   :  { %570 = vsyncpa [#allocation5], 1 }

</bundles_post_ra>
